<compile_context>
chip_gen: v6e
topology: v6e:2x2x1
jax: 0.10.0
libtpu: 0.0.40
codegen_flags: <defaults>
</compile_context>

<pallas_src>
import functools

import jax
import jax.numpy as jnp
from jax.experimental import pallas as pl
from jax.experimental.pallas import tpu as pltpu

# gray_coeffs / 256, matching GradLayer.get_gray
_GRAY_COEFFS = (65.738 / 256.0, 129.057 / 256.0, 25.064 / 256.0)


def _to_gray(a, keepdims=False):
    """a: (C, ...) channels-first float32 block -> grayscale (...)"""
    c = a.shape[0]

    def ch(i):
        return a[i:i + 1] if keepdims else a[i]

    if c == 3:
        return (ch(0) * _GRAY_COEFFS[0]
                + ch(1) * _GRAY_COEFFS[1]
                + ch(2) * _GRAY_COEFFS[2])
    return ch(0)


def _grad_kernel(xc_ref, halo_ref, mask_ref, o_ref, *, img_h, mask_cols, ragged):
    # xc_ref  : (C, TH, Wp)    current H-tile (W padded to Wp, zeros in pad)
    # halo_ref: (2, C, Wp)     [0]=row above tile, [1]=row below tile (zeros at
    #                          the image top/bottom)
    # mask_ref: (2, Wp) f32    [0]=1 where j < W-1, [1]=1 where j > 0
    #                          (only used when W is already lane-aligned)
    # o_ref   : (TH, Wp)
    TH, Wp = o_ref.shape
    f32 = jnp.float32

    gray = _to_gray(xc_ref[...].astype(f32))                          # (TH, Wp)
    gray_up = _to_gray(halo_ref[0].astype(f32), keepdims=True)        # (1, Wp)
    gray_dn = _to_gray(halo_ref[1].astype(f32), keepdims=True)        # (1, Wp)

    if mask_cols:
        mr = mask_ref[0:1, :]     # right-neighbour valid (j < W-1)
        ml = mask_ref[1:2, :]     # left-neighbour valid  (j > 0)

    def horiz(g):
        # x(i, j+1) - x(i, j-1) with zero padding at the left/right image edge.
        # When W was padded to Wp the pad columns are zero, so the lane wrap
        # already produces the correct zeros and no mask is needed.
        xp1 = pltpu.roll(g, shift=Wp - 1, axis=1)    # g[:, (j+1) % Wp]
        xm1 = pltpu.roll(g, shift=1, axis=1)         # g[:, (j-1) % Wp]
        if mask_cols:
            xp1 = xp1 * mr
            xm1 = xm1 * ml
        return xp1 - xm1

    def finalize(g_v, g_h):
        return jnp.sqrt(g_v * g_v + g_h * g_h + 1e-6).astype(o_ref.dtype)

    if not ragged:
        if TH == 1:
            # Degenerate single-row tile: both vertical neighbours are halos.
            o_ref[...] = finalize(gray_dn - gray_up, horiz(gray))
            return

        # Bulk: vertical difference via sublane rolls (XLU).  Rows 0 and TH-1
        # wrap around and are wrong; they are overwritten below from cheap
        # single-row reads (2 masked row stores per tile), which removes the
        # per-element row iota/compare/select work.
        g_v = (pltpu.roll(gray, shift=TH - 1, axis=0)   # gray[(r+1) % TH]
               - pltpu.roll(gray, shift=1, axis=0))     # gray[(r-1) % TH]
        o_ref[...] = finalize(g_v, horiz(gray))

        # Row 0 fix: x(i-1) is the 'up' halo row (zero at the image top).
        gr0 = _to_gray(xc_ref[:, 0:1, :].astype(f32))
        gr1 = _to_gray(xc_ref[:, 1:2, :].astype(f32))
        o_ref[0:1, :] = finalize(gr1 - gray_up, horiz(gr0))

        # Row TH-1 fix: x(i+1) is the 'down' halo row (zero at the image bottom).
        grL = _to_gray(xc_ref[:, TH - 1:TH, :].astype(f32))
        grLm = _to_gray(xc_ref[:, TH - 2:TH - 1, :].astype(f32))
        o_ref[TH - 1:TH, :] = finalize(gray_dn - grLm, horiz(grL))
        return

    # ---- Ragged fallback (H % TH != 0): original validated select/mask path.
    row = jax.lax.broadcasted_iota(jnp.int32, (TH, Wp), 0)
    grow = row + pl.program_id(1) * TH                   # image-global row

    x_ip1 = pltpu.roll(gray, shift=TH - 1, axis=0)       # gray[(r+1) % TH]
    x_ip1 = jnp.where(row == TH - 1, gray_dn, x_ip1)
    x_ip1 = jnp.where(grow < img_h - 1, x_ip1, 0.0)      # bottom zero pad /
                                                         # garbage rows of the
                                                         # partial last tile
    x_im1 = pltpu.roll(gray, shift=1, axis=0)            # gray[(r-1) % TH]
    x_im1 = jnp.where(row == 0, gray_up, x_im1)

    o_ref[...] = finalize(x_ip1 - x_im1, horiz(gray))


def _pick_tile_h(H, Wp, C, in_itemsize, out_itemsize, budget_bytes=14 << 20):
    """Largest H-tile whose double-buffered blocks + ~6 live f32 temporaries
    stay under `budget_bytes`, preferring divisors of H (multiples of 8)."""
    per_row = (2 * C * Wp * in_itemsize      # input block, double-buffered
               + 2 * Wp * out_itemsize       # output block, double-buffered
               + 6 * Wp * 4)                 # ~6 live f32 (TH, Wp) temporaries
    th_cap = max(8, budget_bytes // per_row)
    if H <= th_cap:
        return H                             # full dim -> always a legal block
    if H % 8 == 0:
        th = (th_cap // 8) * 8
        while th > 8 and H % th != 0:
            th -= 8
        return max(th, 8)                    # 8 always divides H here
    # H not 8-aligned and too tall for one block: ragged fallback path.
    return max(8, (th_cap // 8) * 8)


def grad_layer(x, *, tile_h=None):
    """x: (N, C, H, W), C in {1, 3}.  Returns (N, 1, H, W), dtype of x."""
    N, C, H, W = x.shape
    assert C in (1, 3), "GradLayer expects 1- or 3-channel NCHW input"
    in_itemsize = jnp.dtype(x.dtype).itemsize
    out_itemsize = in_itemsize

    # Pad W to a lane-dense multiple of 128 (zero pad). The zero pad columns
    # double as the left/right image-border zeros.
    Wp = -(-W // 128) * 128
    mask_cols = (Wp == W)
    xp = x if Wp == W else jnp.pad(x, ((0, 0), (0, 0), (0, 0), (0, Wp - W)))

    TH = tile_h if tile_h is not None else _pick_tile_h(H, Wp, C, in_itemsize,
                                                        out_itemsize)
    TH = min(TH, H)
    nH = -(-H // TH)
    ragged = (H % TH) != 0

    # Single-row halos above/below each H-tile, folded into one array so each
    # grid step issues a single small DMA:  halo[n, h, 0] = row h*TH - 1,
    # halo[n, h, 1] = row (h+1)*TH  (zeros at the image top / bottom).
    zrow = jnp.zeros((N, C, 1, Wp), x.dtype)
    up_rows = xp[:, :, TH - 1::TH, :][:, :, :nH - 1, :]   # rows h*TH - 1, h>=1
    dn_rows = xp[:, :, TH::TH, :][:, :, :nH - 1, :]       # rows (h+1)*TH, h<nH-1
    halo_up = jnp.concatenate([zrow, up_rows], axis=2)    # (N, C, nH, Wp)
    halo_dn = jnp.concatenate([dn_rows, zrow], axis=2)    # (N, C, nH, Wp)
    halo = jnp.transpose(jnp.stack([halo_up, halo_dn], axis=1),
                         (0, 3, 1, 2, 4))                 # (N, nH, 2, C, Wp)

    # Tiny resident column-validity masks (only multiplied in when W == Wp).
    col = jnp.arange(Wp, dtype=jnp.int32)
    mask = jnp.stack([col < W - 1, col > 0]).astype(jnp.float32)  # (2, Wp)

    kernel = functools.partial(_grad_kernel, img_h=H, mask_cols=mask_cols,
                               ragged=ragged)

    bytes_accessed = ((N * C * H * Wp + N * H * Wp) * in_itemsize
                      + halo.size * in_itemsize + mask.size * 4)
    cost = pl.CostEstimate(flops=25 * N * H * Wp,
                           transcendentals=N * H * Wp,
                           bytes_accessed=int(bytes_accessed))

    out = pl.pallas_call(
        kernel,
        out_shape=jax.ShapeDtypeStruct((N, 1, H, Wp), x.dtype),
        grid=(N, nH),
        in_specs=[
            pl.BlockSpec((None, C, TH, Wp), lambda n, h: (n, 0, h, 0)),
            pl.BlockSpec((None, None, 2, C, Wp), lambda n, h: (n, h, 0, 0, 0)),
            pl.BlockSpec((2, Wp), lambda n, h: (0, 0)),
        ],
        out_specs=pl.BlockSpec((None, None, TH, Wp), lambda n, h: (n, 0, h, 0)),
        compiler_params=pltpu.CompilerParams(
            dimension_semantics=("parallel", "parallel"),
            vmem_limit_bytes=32 * 1024 * 1024),
        cost_estimate=cost,
    )(xp, halo, mask)

    return out if Wp == W else out[..., :W]


def _reference(x):
    """Pure-JAX reference matching the PyTorch forward exactly."""
    N, C, H, W = x.shape
    if C == 3:
        coeffs = jnp.array(_GRAY_COEFFS, dtype=x.dtype).reshape(1, 3, 1, 1)
        x = (x * coeffs).sum(axis=1, keepdims=True)
    g = x[:, 0]
    gp = jnp.pad(g, ((0, 0), (1, 1), (1, 1)))
    g_v = gp[:, 2:, 1:-1] - gp[:, :-2, 1:-1]
    g_h = gp[:, 1:-1, 2:] - gp[:, 1:-1, :-2]
    return jnp.sqrt(g_v ** 2 + g_h ** 2 + 1e-6)[:, None]


if __name__ == "__main__":
    key = jax.random.PRNGKey(0)
    k1, k2, k3, k4 = jax.random.split(key, 4)

    def check(x, **kw):
        out = grad_layer(x, **kw)
        jax.block_until_ready(out)
        ref = _reference(x)
        assert out.shape == ref.shape, (out.shape, ref.shape)
        assert jnp.allclose(out, ref, atol=1e-5, rtol=1e-5), (
            float(jnp.max(jnp.abs(out - ref))))

    # RGB, small W (padded to 128 lanes), single H tile.
    check(jax.random.uniform(k1, (2, 3, 16, 16), dtype=jnp.float32))
    # Grayscale input (C == 1 path).
    check(jax.random.uniform(k2, (2, 1, 16, 16), dtype=jnp.float32))
    # Multi-tile H (halo seams + per-tile row fixes) with non-128-multiple W.
    check(jax.random.uniform(k3, (1, 3, 48, 100), dtype=jnp.float32), tile_h=16)
    # Ragged last tile + lane-exact W (resident column-mask path).
    check(jax.random.uniform(k4, (1, 3, 20, 128), dtype=jnp.float32), tile_h=8)

    print("KERNEL_OK")
</pallas_src>

<mosaic_0001>
module attributes {stable_mosaic.version = 11 : i64} {
  func.func @_grad_kernel(%arg0: i32, %arg1: i32, %arg2: memref<1x3x16x128xf32, #tpu.memory_space<vmem>>, %arg3: memref<1x1x2x3x128xf32, #tpu.memory_space<vmem>>, %arg4: memref<2x128xf32, #tpu.memory_space<vmem>>, %arg5: memref<1x1x16x128xf32, #tpu.memory_space<vmem>>) attributes {dimension_semantics = [#tpu.dimension_semantics<parallel>, #tpu.dimension_semantics<parallel>], iteration_bounds = array<i64: 2, 1>, scalar_prefetch = 0 : i64, scratch_operands = 0 : i64, tpu.core_type = #tpu.core_type<tc>, window_params = [{transform_indices = @transform_0, window_bounds = array<i64: 1, 3, 16, 128>}, {transform_indices = @transform_1, window_bounds = array<i64: 1, 1, 2, 3, 128>}, {pipeline_mode = #tpu.pipeline_mode<synchronous>, transform_indices = @transform_2, window_bounds = array<i64: 2, 128>}, {transform_indices = @transform_3, window_bounds = array<i64: 1, 1, 16, 128>}]} {
    %c0 = arith.constant 0 : index
    %c0_0 = arith.constant 0 : index
    %c0_1 = arith.constant 0 : index
    %c0_2 = arith.constant 0 : index
    %0 = vector.load %arg2[%c0, %c0_0, %c0_1, %c0_2] : memref<1x3x16x128xf32, #tpu.memory_space<vmem>>, vector<1x3x16x128xf32>
    %1 = vector.shape_cast %0 : vector<1x3x16x128xf32> to vector<3x16x128xf32>
    %2 = vector.extract_strided_slice %1 {offsets = [0, 0, 0], sizes = [1, 16, 128], strides = [1, 1, 1]} : vector<3x16x128xf32> to vector<1x16x128xf32>
    %3 = vector.shape_cast %2 : vector<1x16x128xf32> to vector<16x128xf32>
    %cst = arith.constant 0.256789058 : f32
    %4 = vector.broadcast %cst : f32 to vector<16x128xf32>
    %5 = arith.mulf %3, %4 : vector<16x128xf32>
    %6 = vector.extract_strided_slice %1 {offsets = [1, 0, 0], sizes = [1, 16, 128], strides = [1, 1, 1]} : vector<3x16x128xf32> to vector<1x16x128xf32>
    %7 = vector.shape_cast %6 : vector<1x16x128xf32> to vector<16x128xf32>
    %cst_3 = arith.constant 0.504128933 : f32
    %8 = vector.broadcast %cst_3 : f32 to vector<16x128xf32>
    %9 = arith.mulf %7, %8 : vector<16x128xf32>
    %10 = arith.addf %5, %9 : vector<16x128xf32>
    %11 = vector.extract_strided_slice %1 {offsets = [2, 0, 0], sizes = [1, 16, 128], strides = [1, 1, 1]} : vector<3x16x128xf32> to vector<1x16x128xf32>
    %12 = vector.shape_cast %11 : vector<1x16x128xf32> to vector<16x128xf32>
    %cst_4 = arith.constant 0.0979062467 : f32
    %13 = vector.broadcast %cst_4 : f32 to vector<16x128xf32>
    %14 = arith.mulf %12, %13 : vector<16x128xf32>
    %15 = arith.addf %10, %14 : vector<16x128xf32>
    %c0_5 = arith.constant 0 : index
    %c0_6 = arith.constant 0 : index
    %c0_7 = arith.constant 0 : index
    %c0_8 = arith.constant 0 : index
    %c0_9 = arith.constant 0 : index
    %16 = vector.load %arg3[%c0_5, %c0_6, %c0_7, %c0_8, %c0_9] : memref<1x1x2x3x128xf32, #tpu.memory_space<vmem>>, vector<1x1x1x3x128xf32>
    %17 = vector.shape_cast %16 : vector<1x1x1x3x128xf32> to vector<3x128xf32>
    %18 = vector.extract_strided_slice %17 {offsets = [0, 0], sizes = [1, 128], strides = [1, 1]} : vector<3x128xf32> to vector<1x128xf32>
    %cst_10 = arith.constant 0.256789058 : f32
    %19 = vector.broadcast %cst_10 : f32 to vector<1x128xf32>
    %20 = arith.mulf %18, %19 : vector<1x128xf32>
    %21 = vector.extract_strided_slice %17 {offsets = [1, 0], sizes = [1, 128], strides = [1, 1]} : vector<3x128xf32> to vector<1x128xf32>
    %cst_11 = arith.constant 0.504128933 : f32
    %22 = vector.broadcast %cst_11 : f32 to vector<1x128xf32>
    %23 = arith.mulf %21, %22 : vector<1x128xf32>
    %24 = arith.addf %20, %23 : vector<1x128xf32>
    %25 = vector.extract_strided_slice %17 {offsets = [2, 0], sizes = [1, 128], strides = [1, 1]} : vector<3x128xf32> to vector<1x128xf32>
    %cst_12 = arith.constant 0.0979062467 : f32
    %26 = vector.broadcast %cst_12 : f32 to vector<1x128xf32>
    %27 = arith.mulf %25, %26 : vector<1x128xf32>
    %28 = arith.addf %24, %27 : vector<1x128xf32>
    %c0_13 = arith.constant 0 : index
    %c0_14 = arith.constant 0 : index
    %c1 = arith.constant 1 : index
    %c0_15 = arith.constant 0 : index
    %c0_16 = arith.constant 0 : index
    %29 = vector.load %arg3[%c0_13, %c0_14, %c1, %c0_15, %c0_16] : memref<1x1x2x3x128xf32, #tpu.memory_space<vmem>>, vector<1x1x1x3x128xf32>
    %30 = vector.shape_cast %29 : vector<1x1x1x3x128xf32> to vector<3x128xf32>
    %31 = vector.extract_strided_slice %30 {offsets = [0, 0], sizes = [1, 128], strides = [1, 1]} : vector<3x128xf32> to vector<1x128xf32>
    %cst_17 = arith.constant 0.256789058 : f32
    %32 = vector.broadcast %cst_17 : f32 to vector<1x128xf32>
    %33 = arith.mulf %31, %32 : vector<1x128xf32>
    %34 = vector.extract_strided_slice %30 {offsets = [1, 0], sizes = [1, 128], strides = [1, 1]} : vector<3x128xf32> to vector<1x128xf32>
    %cst_18 = arith.constant 0.504128933 : f32
    %35 = vector.broadcast %cst_18 : f32 to vector<1x128xf32>
    %36 = arith.mulf %34, %35 : vector<1x128xf32>
    %37 = arith.addf %33, %36 : vector<1x128xf32>
    %38 = vector.extract_strided_slice %30 {offsets = [2, 0], sizes = [1, 128], strides = [1, 1]} : vector<3x128xf32> to vector<1x128xf32>
    %cst_19 = arith.constant 0.0979062467 : f32
    %39 = vector.broadcast %cst_19 : f32 to vector<1x128xf32>
    %40 = arith.mulf %38, %39 : vector<1x128xf32>
    %41 = arith.addf %37, %40 : vector<1x128xf32>
    %c15_i32 = arith.constant 15 : i32
    %42 = tpu.dynamic_rotate %15 by %c15_i32 dim 0 : vector<16x128xf32>, i32 -> vector<16x128xf32>
    %c1_i32 = arith.constant 1 : i32
    %43 = tpu.dynamic_rotate %15 by %c1_i32 dim 0 : vector<16x128xf32>, i32 -> vector<16x128xf32>
    %44 = arith.subf %42, %43 : vector<16x128xf32>
    %c127_i32 = arith.constant 127 : i32
    %45 = tpu.dynamic_rotate %15 by %c127_i32 dim 1 : vector<16x128xf32>, i32 -> vector<16x128xf32>
    %c1_i32_20 = arith.constant 1 : i32
    %46 = tpu.dynamic_rotate %15 by %c1_i32_20 dim 1 : vector<16x128xf32>, i32 -> vector<16x128xf32>
    %47 = arith.subf %45, %46 : vector<16x128xf32>
    %48 = arith.mulf %44, %44 : vector<16x128xf32>
    %49 = arith.mulf %47, %47 : vector<16x128xf32>
    %50 = arith.addf %48, %49 : vector<16x128xf32>
    %cst_21 = arith.constant 9.99999997E-7 : f32
    %51 = vector.broadcast %cst_21 : f32 to vector<16x128xf32>
    %52 = arith.addf %50, %51 : vector<16x128xf32>
    %53 = math.sqrt %52 : vector<16x128xf32>
    %c0_22 = arith.constant 0 : index
    %c0_23 = arith.constant 0 : index
    %c0_24 = arith.constant 0 : index
    %c0_25 = arith.constant 0 : index
    %54 = vector.load %arg5[%c0_22, %c0_23, %c0_24, %c0_25] : memref<1x1x16x128xf32, #tpu.memory_space<vmem>>, vector<1x1x16x128xf32>
    %55 = vector.shape_cast %54 : vector<1x1x16x128xf32> to vector<16x128xf32>
    %56 = vector.shape_cast %53 : vector<16x128xf32> to vector<1x1x16x128xf32>
    tpu.vector_store %arg5[%c0_22, %c0_23, %c0_24, %c0_25], %56 {strides = array<i32>} : memref<1x1x16x128xf32, #tpu.memory_space<vmem>>, vector<1x1x16x128xf32>,
    %c0_26 = arith.constant 0 : index
    %c0_27 = arith.constant 0 : index
    %c0_28 = arith.constant 0 : index
    %c0_29 = arith.constant 0 : index
    %57 = vector.load %arg2[%c0_26, %c0_27, %c0_28, %c0_29] : memref<1x3x16x128xf32, #tpu.memory_space<vmem>>, vector<1x3x1x128xf32>
    %58 = vector.shape_cast %57 : vector<1x3x1x128xf32> to vector<3x1x128xf32>
    %59 = vector.extract_strided_slice %58 {offsets = [0, 0, 0], sizes = [1, 1, 128], strides = [1, 1, 1]} : vector<3x1x128xf32> to vector<1x1x128xf32>
    %60 = vector.shape_cast %59 : vector<1x1x128xf32> to vector<1x128xf32>
    %cst_30 = arith.constant 0.256789058 : f32
    %61 = vector.broadcast %cst_30 : f32 to vector<1x128xf32>
    %62 = arith.mulf %60, %61 : vector<1x128xf32>
    %63 = vector.extract_strided_slice %58 {offsets = [1, 0, 0], sizes = [1, 1, 128], strides = [1, 1, 1]} : vector<3x1x128xf32> to vector<1x1x128xf32>
    %64 = vector.shape_cast %63 : vector<1x1x128xf32> to vector<1x128xf32>
    %cst_31 = arith.constant 0.504128933 : f32
    %65 = vector.broadcast %cst_31 : f32 to vector<1x128xf32>
    %66 = arith.mulf %64, %65 : vector<1x128xf32>
    %67 = arith.addf %62, %66 : vector<1x128xf32>
    %68 = vector.extract_strided_slice %58 {offsets = [2, 0, 0], sizes = [1, 1, 128], strides = [1, 1, 1]} : vector<3x1x128xf32> to vector<1x1x128xf32>
    %69 = vector.shape_cast %68 : vector<1x1x128xf32> to vector<1x128xf32>
    %cst_32 = arith.constant 0.0979062467 : f32
    %70 = vector.broadcast %cst_32 : f32 to vector<1x128xf32>
    %71 = arith.mulf %69, %70 : vector<1x128xf32>
    %72 = arith.addf %67, %71 : vector<1x128xf32>
    %c0_33 = arith.constant 0 : index
    %c0_34 = arith.constant 0 : index
    %c1_35 = arith.constant 1 : index
    %c0_36 = arith.constant 0 : index
    %73 = vector.load %arg2[%c0_33, %c0_34, %c1_35, %c0_36] : memref<1x3x16x128xf32, #tpu.memory_space<vmem>>, vector<1x3x1x128xf32>
    %74 = vector.shape_cast %73 : vector<1x3x1x128xf32> to vector<3x1x128xf32>
    %75 = vector.extract_strided_slice %74 {offsets = [0, 0, 0], sizes = [1, 1, 128], strides = [1, 1, 1]} : vector<3x1x128xf32> to vector<1x1x128xf32>
    %76 = vector.shape_cast %75 : vector<1x1x128xf32> to vector<1x128xf32>
    %cst_37 = arith.constant 0.256789058 : f32
    %77 = vector.broadcast %cst_37 : f32 to vector<1x128xf32>
    %78 = arith.mulf %76, %77 : vector<1x128xf32>
    %79 = vector.extract_strided_slice %74 {offsets = [1, 0, 0], sizes = [1, 1, 128], strides = [1, 1, 1]} : vector<3x1x128xf32> to vector<1x1x128xf32>
    %80 = vector.shape_cast %79 : vector<1x1x128xf32> to vector<1x128xf32>
    %cst_38 = arith.constant 0.504128933 : f32
    %81 = vector.broadcast %cst_38 : f32 to vector<1x128xf32>
    %82 = arith.mulf %80, %81 : vector<1x128xf32>
    %83 = arith.addf %78, %82 : vector<1x128xf32>
    %84 = vector.extract_strided_slice %74 {offsets = [2, 0, 0], sizes = [1, 1, 128], strides = [1, 1, 1]} : vector<3x1x128xf32> to vector<1x1x128xf32>
    %85 = vector.shape_cast %84 : vector<1x1x128xf32> to vector<1x128xf32>
    %cst_39 = arith.constant 0.0979062467 : f32
    %86 = vector.broadcast %cst_39 : f32 to vector<1x128xf32>
    %87 = arith.mulf %85, %86 : vector<1x128xf32>
    %88 = arith.addf %83, %87 : vector<1x128xf32>
    %89 = arith.subf %88, %28 : vector<1x128xf32>
    %c127_i32_40 = arith.constant 127 : i32
    %90 = tpu.dynamic_rotate %72 by %c127_i32_40 dim 1 : vector<1x128xf32>, i32 -> vector<1x128xf32>
    %c1_i32_41 = arith.constant 1 : i32
    %91 = tpu.dynamic_rotate %72 by %c1_i32_41 dim 1 : vector<1x128xf32>, i32 -> vector<1x128xf32>
    %92 = arith.subf %90, %91 : vector<1x128xf32>
    %93 = arith.mulf %89, %89 : vector<1x128xf32>
    %94 = arith.mulf %92, %92 : vector<1x128xf32>
    %95 = arith.addf %93, %94 : vector<1x128xf32>
    %cst_42 = arith.constant 9.99999997E-7 : f32
    %96 = vector.broadcast %cst_42 : f32 to vector<1x128xf32>
    %97 = arith.addf %95, %96 : vector<1x128xf32>
    %98 = math.sqrt %97 : vector<1x128xf32>
    %c0_43 = arith.constant 0 : index
    %c0_44 = arith.constant 0 : index
    %c0_45 = arith.constant 0 : index
    %c0_46 = arith.constant 0 : index
    %99 = vector.load %arg5[%c0_43, %c0_44, %c0_45, %c0_46] : memref<1x1x16x128xf32, #tpu.memory_space<vmem>>, vector<1x1x1x128xf32>
    %100 = vector.shape_cast %99 : vector<1x1x1x128xf32> to vector<1x128xf32>
    %101 = vector.shape_cast %98 : vector<1x128xf32> to vector<1x1x1x128xf32>
    tpu.vector_store %arg5[%c0_43, %c0_44, %c0_45, %c0_46], %101 {strides = array<i32>} : memref<1x1x16x128xf32, #tpu.memory_space<vmem>>, vector<1x1x1x128xf32>,
    %c0_47 = arith.constant 0 : index
    %c0_48 = arith.constant 0 : index
    %c15 = arith.constant 15 : index
    %c0_49 = arith.constant 0 : index
    %102 = vector.load %arg2[%c0_47, %c0_48, %c15, %c0_49] : memref<1x3x16x128xf32, #tpu.memory_space<vmem>>, vector<1x3x1x128xf32>
    %103 = vector.shape_cast %102 : vector<1x3x1x128xf32> to vector<3x1x128xf32>
    %104 = vector.extract_strided_slice %103 {offsets = [0, 0, 0], sizes = [1, 1, 128], strides = [1, 1, 1]} : vector<3x1x128xf32> to vector<1x1x128xf32>
    %105 = vector.shape_cast %104 : vector<1x1x128xf32> to vector<1x128xf32>
    %cst_50 = arith.constant 0.256789058 : f32
    %106 = vector.broadcast %cst_50 : f32 to vector<1x128xf32>
    %107 = arith.mulf %105, %106 : vector<1x128xf32>
    %108 = vector.extract_strided_slice %103 {offsets = [1, 0, 0], sizes = [1, 1, 128], strides = [1, 1, 1]} : vector<3x1x128xf32> to vector<1x1x128xf32>
    %109 = vector.shape_cast %108 : vector<1x1x128xf32> to vector<1x128xf32>
    %cst_51 = arith.constant 0.504128933 : f32
    %110 = vector.broadcast %cst_51 : f32 to vector<1x128xf32>
    %111 = arith.mulf %109, %110 : vector<1x128xf32>
    %112 = arith.addf %107, %111 : vector<1x128xf32>
    %113 = vector.extract_strided_slice %103 {offsets = [2, 0, 0], sizes = [1, 1, 128], strides = [1, 1, 1]} : vector<3x1x128xf32> to vector<1x1x128xf32>
    %114 = vector.shape_cast %113 : vector<1x1x128xf32> to vector<1x128xf32>
    %cst_52 = arith.constant 0.0979062467 : f32
    %115 = vector.broadcast %cst_52 : f32 to vector<1x128xf32>
    %116 = arith.mulf %114, %115 : vector<1x128xf32>
    %117 = arith.addf %112, %116 : vector<1x128xf32>
    %c0_53 = arith.constant 0 : index
    %c0_54 = arith.constant 0 : index
    %c14 = arith.constant 14 : index
    %c0_55 = arith.constant 0 : index
    %118 = vector.load %arg2[%c0_53, %c0_54, %c14, %c0_55] : memref<1x3x16x128xf32, #tpu.memory_space<vmem>>, vector<1x3x1x128xf32>
    %119 = vector.shape_cast %118 : vector<1x3x1x128xf32> to vector<3x1x128xf32>
    %120 = vector.extract_strided_slice %119 {offsets = [0, 0, 0], sizes = [1, 1, 128], strides = [1, 1, 1]} : vector<3x1x128xf32> to vector<1x1x128xf32>
    %121 = vector.shape_cast %120 : vector<1x1x128xf32> to vector<1x128xf32>
    %cst_56 = arith.constant 0.256789058 : f32
    %122 = vector.broadcast %cst_56 : f32 to vector<1x128xf32>
    %123 = arith.mulf %121, %122 : vector<1x128xf32>
    %124 = vector.extract_strided_slice %119 {offsets = [1, 0, 0], sizes = [1, 1, 128], strides = [1, 1, 1]} : vector<3x1x128xf32> to vector<1x1x128xf32>
    %125 = vector.shape_cast %124 : vector<1x1x128xf32> to vector<1x128xf32>
    %cst_57 = arith.constant 0.504128933 : f32
    %126 = vector.broadcast %cst_57 : f32 to vector<1x128xf32>
    %127 = arith.mulf %125, %126 : vector<1x128xf32>
    %128 = arith.addf %123, %127 : vector<1x128xf32>
    %129 = vector.extract_strided_slice %119 {offsets = [2, 0, 0], sizes = [1, 1, 128], strides = [1, 1, 1]} : vector<3x1x128xf32> to vector<1x1x128xf32>
    %130 = vector.shape_cast %129 : vector<1x1x128xf32> to vector<1x128xf32>
    %cst_58 = arith.constant 0.0979062467 : f32
    %131 = vector.broadcast %cst_58 : f32 to vector<1x128xf32>
    %132 = arith.mulf %130, %131 : vector<1x128xf32>
    %133 = arith.addf %128, %132 : vector<1x128xf32>
    %134 = arith.subf %41, %133 : vector<1x128xf32>
    %c127_i32_59 = arith.constant 127 : i32
    %135 = tpu.dynamic_rotate %117 by %c127_i32_59 dim 1 : vector<1x128xf32>, i32 -> vector<1x128xf32>
    %c1_i32_60 = arith.constant 1 : i32
    %136 = tpu.dynamic_rotate %117 by %c1_i32_60 dim 1 : vector<1x128xf32>, i32 -> vector<1x128xf32>
    %137 = arith.subf %135, %136 : vector<1x128xf32>
    %138 = arith.mulf %134, %134 : vector<1x128xf32>
    %139 = arith.mulf %137, %137 : vector<1x128xf32>
    %140 = arith.addf %138, %139 : vector<1x128xf32>
    %cst_61 = arith.constant 9.99999997E-7 : f32
    %141 = vector.broadcast %cst_61 : f32 to vector<1x128xf32>
    %142 = arith.addf %140, %141 : vector<1x128xf32>
    %143 = math.sqrt %142 : vector<1x128xf32>
    %c0_62 = arith.constant 0 : index
    %c0_63 = arith.constant 0 : index
    %c15_64 = arith.constant 15 : index
    %c0_65 = arith.constant 0 : index
    %144 = vector.load %arg5[%c0_62, %c0_63, %c15_64, %c0_65] : memref<1x1x16x128xf32, #tpu.memory_space<vmem>>, vector<1x1x1x128xf32>
    %145 = vector.shape_cast %144 : vector<1x1x1x128xf32> to vector<1x128xf32>
    %146 = vector.shape_cast %143 : vector<1x128xf32> to vector<1x1x1x128xf32>
    tpu.vector_store %arg5[%c0_62, %c0_63, %c15_64, %c0_65], %146 {strides = array<i32>} : memref<1x1x16x128xf32, #tpu.memory_space<vmem>>, vector<1x1x1x128xf32>,
    return
  }
  func.func @transform_0(%arg0: i32, %arg1: i32) -> (i32, i32, i32, i32) {
    %c0_i32 = arith.constant 0 : i32
    %c0_i32_0 = arith.constant 0 : i32
    %c0_i32_1 = arith.constant 0 : i32
    return %arg0, %c0_i32, %arg1, %c0_i32_0 : i32, i32, i32, i32
  }
  func.func @transform_1(%arg0: i32, %arg1: i32) -> (i32, i32, i32, i32, i32) {
    %c0_i32 = arith.constant 0 : i32
    %c0_i32_0 = arith.constant 0 : i32
    %c0_i32_1 = arith.constant 0 : i32
    %c0_i32_2 = arith.constant 0 : i32
    return %arg0, %arg1, %c0_i32, %c0_i32_0, %c0_i32_1 : i32, i32, i32, i32, i32
  }
  func.func @transform_2(%arg0: i32, %arg1: i32) -> (i32, i32) {
    %c0_i32 = arith.constant 0 : i32
    %c0_i32_0 = arith.constant 0 : i32
    %c0_i32_1 = arith.constant 0 : i32
    return %c0_i32, %c0_i32_0 : i32, i32
  }
  func.func @transform_3(%arg0: i32, %arg1: i32) -> (i32, i32, i32, i32) {
    %c0_i32 = arith.constant 0 : i32
    %c0_i32_0 = arith.constant 0 : i32
    %c0_i32_1 = arith.constant 0 : i32
    return %arg0, %c0_i32, %arg1, %c0_i32_0 : i32, i32, i32, i32
  }
}

</mosaic_0001>

<bundles_post_ra>
// kernel: tpu_custom_call.1
= control target key start
LH: loop header
LB: loop body
LE: loop exit
PB: predicated region body
PF: predicated region fallthrough
CT: control target
= control target key end

     0   :  { %8 = vsyncpa [#allocation3], 0  ;;  %s930_s0 = inlined_call_operand.hbm [shape: f32[2,3,16,128], index: 0, kind: input, shape index: {}]   ;;  %s931_s1 = inlined_call_operand.vmem [shape: f32[2,1,2,3,128], index: 1, kind: input, shape index: {}]   ;;  %s932_s2 = inlined_call_operand.vmem [shape: f32[2,128], index: 2, kind: input, shape index: {}]   ;;  %s933_s3 = inlined_call_operand.hbm [shape: f32[2,1,16,128], index: 3, kind: output, shape index: {}]  }
   0x1   :  { %10 = vsyncpa [#allocation3 + $0x1], 0 }
   0x2   :  { %11 = vsyncpa [#allocation4], 0 }
   0x3   :  { %13 = vsyncpa [#allocation4 + $0x1], 0  ;;  %s758_s12 = smov 0   ;;  %s760_s13 = smov 0  }
   0x4   :  { %s762_s14 = smov 0   ;;  %s764_s15 = smov 0  }
   0x5   :  { %s766_s16 = smov 0   ;;  %s768_s17 = smov 0  }
   0x6 LB: > { %s524_s2 = sadd.s32 4294967295, %s728_s17   ;;  %s525_s18 = sadd.s32 4294967294, %s728_s17   ;;  %s728_s17 = sphi %s768_s17, %s19_s17   ;;  %s724_s16 = sphi %s766_s16, %s944_s16   ;;  %s720_s15 = sphi %s764_s15, %s943_s15   ;;  %s716_s14 = sphi %s762_s14, %s942_s14   ;;  %s712_s13 = sphi %s760_s13, %s941_s13   ;;  %s708_s12 = sphi %s758_s12, %s940_s12  }
   0x7   : > { %s31_s19 = sadd.s32 1, %s724_s16  ;;  %s40_s20 = sadd.s32 1, %s716_s14 }
   0x8   : > { %p33_p0 = scmp.ge.s32.totalorder %s31_s19, 2  ;;  %p47_p1 = scmp.ne.s32.totalorder %s716_s14, %s712_s13 }
   0x9   : > { %p48_p2 = scmp.eq.s32.totalorder %s728_s17, 0  ;;  %p53_p3 = scmp.ne.s32.totalorder %s712_s13, %s708_s12 }
   0xa   : > { %s946_s19 = smov (%p33_p0, %s31_s19), 0  ;;  %p54_p5 = scmp.eq.s32.totalorder %s524_s2, 0 }
   0xb   : > { %p799_p4 = por %p48_p2, %p47_p1  ;;  %s35_s22 = ssub.s32 %s724_s16, %s946_s19 }
   0xc   : > { %p128_p6 = scmp.eq.s32.totalorder %s524_s2, 1  ;;  %p38_p7 = scmp.eq.s32.totalorder %s35_s22, 0 }
   0xd   : > { %p805_p8 = por %p54_p5, %p53_p3  ;;  %p134_p10 = scmp.eq.s32.totalorder %s525_s18, 1 }
   0xe   : > { %p809_p9 = por %p128_p6, %p47_p1  ;;  %p556_p13 = scmp.lt.s32.totalorder %s728_s17, 2 }
   0xf   : > { %s814_s25 = scalar_select %p38_p7, %s716_s14, %s40_s20  }
  0x10   : > { %p816_p11 = por %p134_p10, %p53_p3  ;;  %s157_s27 = sand.u32 1, %s716_s14  }
  0x11   : > { %s541_s28 = smul.u32 48, %s157_s27  ;;  %p826_p0 = pnand %p556_p13, %p799_p4 }
  0x12   : > { %s542_s29 = smul.u32 768, %s724_s16  ;;  %p529_p1 = scmp.ge.s32.totalorder %s728_s17, 1 }
  0x13   : > { %s161_s7 = scalar_lea.vmem [#allocation2], %s541_s28  ;;  %s158_s9 = scalar_lea.sflag [#allocation3], %s157_s27 }
  0x14   : > { %s169_s6 = scalar_lea.hbm %s930_s0, %s542_s29  ;;  %s170_s8 = sshll.u32 %s161_s7, 4  ;;  %s171_s8 = int_to_ptr.vmem [resolvable:$true] %s170_s8 }
  0x15   : > { %p622_p2 = pneg %p826_p0  ;;  %s633_s10 = scalar_lea.vmem %s171_s8, 768 }
  0x16   : > { %p634_p3 = scmp.ne.s32.totalorder %s171_s8, %s633_s10  ;;  %s730_s11 = smov [#allocation2]  }
  0x17   : > { %s638_s2 = sshll.u32 %s730_s11, 4  ;;  %s639_s2 = int_to_ptr.vmem [resolvable:$false] %s638_s2 }
  0x18   : > { %p636_p5 = pnand %p634_p3, %p622_p2  ;;  %s640_s18 = scalar_lea.vmem %s639_s2, 1536 }
  0x19   : > { %p641_p4 = scmp.lt.s32.totalorder %s171_s8, %s639_s2  ;;  %p642_p7 = scmp.lt.s32.totalorder %s640_s18, %s633_s10 }
  0x1a   : > { %p637_p6 = pneg %p636_p5 }
  0x1b   : > { %p643_p10 = por %p642_p7, %p641_p4 }
  0x1d   : > { %p644_p13 = pnand %p643_p10, %p637_p6 }
  0x1f   : > { %647 = shalt.err (!%p644_p13)
}
  0x20   : > { %s731_s20 = smov 128   ;;  %s732_s21 = smov 8  }
  0x21   : > { %551 = dma.hbm_to_vmem [thread:$0]  (!%p826_p0), %s169_s6, 768, %s171_s8, %s158_s9, %s731_s20, %s731_s20, %s732_s21  }
  0x22   : > { %p190_p12 = scmp.lt.s32.totalorder %s728_s17, 3 }
  0x24   : > { %p191_p2 = pnand %p529_p1, %p190_p12 }
  0x25   : > { %s842_s22 = sand.u32 (!%p191_p2), 1, %s712_s13  }
  0x26   : > { %194 = sbr.rel (%p191_p2) target bundleno = 218 (0xda), region = 32  ;;  %s197_s28 = scalar_lea.sflag (!%p191_p2), [#allocation3], %s842_s22 }
  0x27   : > { %s543_s27 = smul.u32 (!%p191_p2), 48, %s842_s22 }
  0x29   : > { %s846_s29 = scalar_lea.vmem (!%p191_p2), [#allocation2], %s543_s27 }
  0x2b   : > { %699 = dma.done.wait (%p805_p8), %s197_s28, 768  }
  0x2c   : > { %701 = vsyncadd (%p805_p8), %s197_s28, 4294966528  ;;  %v286_v0 = vlaneseq  ;;  %v243_v1 = vld [vmem:[%s846_s29] sm:$0xff]  ;;  %v245_v2 = vld [vmem:[%s846_s29 + $0x10] sm:$0xff]  ;;  %s733_s23 = smov 1   ;;  %s734_s30 = smov 127  }
  0x2d   : > { %v247_v3 = vld [vmem:[%s846_s29 + $0x20] sm:$0xff]  ;;  %v249_v4 = vmul.f32 0.25678906, %v243_v1  ;;  %v251_v5 = vmul.f32 0.50412893, %v245_v2  ;;  %v244_v7 = vld [vmem:[%s846_s29 + $0x8] sm:$0xff] }
  0x2e   : > { %v255_v6 = vmul.f32 0.09790625, %v247_v3  ;;  %v246_v8 = vld [vmem:[%s846_s29 + $0x18] sm:$0xff]  ;;  %v248_v9 = vld [vmem:[%s846_s29 + $0x28] sm:$0xff]  ;;  %v287_v10 = vshrl.u32 %v286_v0, 7  ;;  %p233_p8 = scmp.lt.s32.totalorder %s720_s15, 1 }
  0x2f   : > { %v253_v11 = vadd.f32 %v251_v5, %v249_v4  ;;  %v250_v12 = vmul.f32 0.25678906, %v244_v7  ;;  %v252_v13 = vmul.f32 0.50412893, %v246_v8  ;;  %v256_v14 = vmul.f32 0.09790625, %v248_v9 }
  0x30   : > { %v332_v15 = vld [vmem:[%s846_s29] sm:$0x1]  ;;  %v333_v16 = vld [vmem:[%s846_s29 + $0x10] sm:$0x1]  ;;  %v366_v22 = vld [vmem:[%s846_s29 + $0xf] sm:$0x1] }
  0x31   : > { %v334_v17 = vld [vmem:[%s846_s29 + $0x20] sm:$0x1]  ;;  %v257_v18 = vadd.f32 %v255_v6, %v253_v11  ;;  %v254_v19 = vadd.f32 %v252_v13, %v250_v12  ;;  %v335_v20 = vmul.f32 0.25678906, %v332_v15  ;;  %v336_v21 = vmul.f32 0.50412893, %v333_v16 }
  0x32   : > { %v338_v23 = vmul.f32 0.09790625, %v334_v17  ;;  %v367_v24 = vld [vmem:[%s846_s29 + $0x1f] sm:$0x1]  ;;  %v369_v27 = vmul.f32 0.25678906, %v366_v22 }
  0x33   : > { %302 = vrot.lane.b32.xlu1 %v257_v18, %s733_s23  ;;  %298 = vrot.lane.b32.xlu0 %v257_v18, %s734_s30  ;;  %v258_v25 = vadd.f32 %v256_v14, %v254_v19  ;;  %v337_v26 = vadd.f32 %v336_v21, %v335_v20  ;;  %v370_v28 = vmul.f32 0.50412893, %v367_v24  ;;  %v368_v29 = vld [vmem:[%s846_s29 + $0x2f] sm:$0x1]  ;;  %vm288_vm0 = vcmp.lt.s32.totalorder %v287_v10, 7  ;;  %s234_s4 = scalar_select %p233_p8, %s720_s15, 1 }
  0x34   : > { %vm293_vm1 = vcmp.lt.s32.totalorder %v287_v10, 1  ;;  %v284_v30 = vrot.slane %v257_v18, 1  ;;  %v291_v31 = vrot.slane %v257_v18, 7  ;;  %v372_v36 = vmul.f32 0.09790625, %v368_v29  ;;  %s530_s9 = sshll.u32 %s842_s22, 4 }
  0x35   : > { %v285_v32 = vrot.slane %v258_v25, 1  ;;  %v292_v33 = vrot.slane %v258_v25, 7  ;;  %v339_v34 = vadd.f32 %v338_v23, %v337_v26  ;;  %v371_v35 = vadd.f32 %v370_v28, %v369_v27  ;;  %s539_s5 = sshll.u32 %s234_s4, 3  ;;  %v340_v47 = vld [vmem:[%s846_s29 + $0x1] sm:$0x1]  ;;  %s231_s10 = scalar_lea.vmem [#allocation5], %s530_s9 }
  0x36   : > { %s241_s8 = scalar_lea.vmem %s931_s1, %s539_s5  ;;  %v341_v48 = vld [vmem:[%s846_s29 + $0x11] sm:$0x1]  ;;  %v342_v52 = vld [vmem:[%s846_s29 + $0x21] sm:$0x1]  ;;  %v374_v53 = vld [vmem:[%s846_s29 + $0xe] sm:$0x1] }
  0x37   : > { %304 = vrot.lane.b32.xlu1 %v258_v25, %s733_s23  ;;  %300 = vrot.lane.b32.xlu0 %v258_v25, %s734_s30  ;;  %v289_v37 = vsel %vm288_vm0, %v284_v30, %v285_v32  ;;  %v295_v38 = vsel %vm293_vm1, %v292_v33, %v291_v31  ;;  %v290_v40 = vsel %vm288_vm0, %v285_v32, %v284_v30  ;;  %v259_v44 = vld [vmem:[%s241_s8] sm:$0x7]  ;;  %v533_v45 = vld [vmem:[%s241_s8 + $0x4] sm:$0x7]  ;;  %v343_v56 = vmul.f32 0.25678906, %v340_v47 }
  0x38   : > { %v296_v39 = vsub.f32 %v289_v37, %v295_v38  ;;  %v294_v41 = vsel %vm293_vm1, %v291_v31, %v292_v33  ;;  %v373_v43 = vadd.f32 %v372_v36, %v371_v35  ;;  %v261_v46 = vmul.f32 0.50412893, %v259_v44  ;;  %v375_v54 = vld [vmem:[%s846_s29 + $0x1e] sm:$0x1]  ;;  %v376_v60 = vld [vmem:[%s846_s29 + $0x2e] sm:$0x1] }
  0x39   : > { %v297_v42 = vsub.f32 %v290_v40, %v294_v41  ;;  %v260_v49 = vmul.f32 0.25678906, %v259_v44  ;;  %v266_v50 = vmul.f32 0.09790625, %v259_v44  ;;  %v274_v51 = vmul.f32 0.50412893, %v533_v45 }
  0x3a   : > { %v263_v55 = vrot.slane %v261_v46, 1  ;;  %v344_v57 = vmul.f32 0.50412893, %v341_v48  ;;  %v273_v58 = vmul.f32 0.25678906, %v533_v45  ;;  %v308_v6 = vmul.f32 %v296_v39, %v296_v39  ;;  %s540_s11 = sshll.u32 %s720_s15, 8 }
  0x3b   : > { %351 = vrot.lane.b32.xlu1 %v339_v34, %s733_s23  ;;  %349 = vrot.lane.b32.xlu0 %v339_v34, %s734_s30  ;;  %v279_v59 = vmul.f32 0.09790625, %v533_v45  ;;  %v276_v61 = vrot.slane %v274_v51, 1  ;;  %v377_v62 = vmul.f32 0.25678906, %v374_v53  ;;  %v268_v1 = vrot.slane %v266_v50, 2  ;;  %s880_s21 = scalar_lea.hbm %s933_s3, %s540_s11 }
  0x3c   : > { %v378_v63 = vmul.f32 0.50412893, %v375_v54  ;;  %v265_v0 = vadd.f32 %v263_v55, %v260_v49  ;;  %v345_v2 = vadd.f32 %v344_v57, %v343_v56  ;;  %v346_v3 = vmul.f32 0.09790625, %v342_v52  ;;  %s416_s2 = sshll.u32 %s231_s10, 4  ;;  %s401_s15 = scalar_lea.sflag [#allocation4], %s842_s22  ;;  %s882_s2 = int_to_ptr.vmem [resolvable:$true] %s416_s2 }
  0x3d   : > { %v380_v7 = vmul.f32 0.09790625, %v376_v60  ;;  %v278_v9 = vadd.f32 %v276_v61, %v273_v58  ;;  %v281_v10 = vrot.slane %v279_v59, 2  ;;  %v309_v21 = vmul.f32 %v297_v42, %v297_v42  ;;  %s648_s27 = scalar_lea.vmem %s882_s2, 256  ;;  %s735_s28 = smov [#allocation5]  }
  0x3e   : > { %v379_v11 = vadd.f32 %v378_v63, %v377_v62  ;;  %v270_v13 = vadd.f32 %v268_v1, %v265_v0  ;;  %v347_v14 = vadd.f32 %v346_v3, %v345_v2  ;;  %p649_p12 = scmp.ne.s32.totalorder %s882_s2, %s648_s27  ;;  %s652_s29 = sshll.u32 %s735_s28, 4  ;;  %s653_s29 = int_to_ptr.vmem [resolvable:$false] %s652_s29 }
  0x3f   : > { %385 = vrot.lane.b32.xlu1 %v373_v43, %s733_s23  ;;  %383 = vrot.lane.b32.xlu0 %v373_v43, %s734_s30  ;;  %v283_v19 = vadd.f32 %v281_v10, %v278_v9  ;;  %s654_s23 = scalar_lea.vmem %s653_s29, 512  ;;  %p655_p3 = scmp.lt.s32.totalorder %s882_s2, %s653_s29 }
  0x40   : > { %v381_v20 = vadd.f32 %v380_v7, %v379_v11  ;;  %v348_v24 = vsub.f32 %v347_v14, %v270_v13  ;;  %p650_p0 = pnand %p649_p12, %p809_p9  ;;  %p656_p5 = scmp.lt.s32.totalorder %s654_s23, %s648_s27 }
  0x42   : > { %v382_v27 = vsub.f32 %v283_v19, %v381_v20  ;;  %v354_v30 = vmul.f32 %v348_v24, %v348_v24  ;;  %p651_p1 = pneg %p650_p0  ;;  %p657_p6 = por %p656_p5, %p655_p3 }
  0x44   : > { %v388_v35 = vmul.f32 %v382_v27, %v382_v27  ;;  %p658_p4 = pnand %p657_p6, %p651_p1 }
  0xa5   : > { %v303_v4 = vpop.permute.xlu1 %302  ;;  %v299_v5 = vpop.permute.xlu0 %298 }
  0xa6   : > { %v306_v8 = vsub.f32 %v299_v5, %v303_v4 }
  0xa8   : > { %v310_v12 = vmul.f32 %v306_v8, %v306_v8 }
  0xa9   : > { %v305_v15 = vpop.permute.xlu1 %304  ;;  %v301_v16 = vpop.permute.xlu0 %300 }
  0xaa   : > { %v312_v17 = vadd.f32 %v310_v12, %v308_v6  ;;  %v307_v18 = vsub.f32 %v301_v16, %v305_v15 }
  0xac   : > { %v314_v22 = vadd.f32 1e-06, %v312_v17  ;;  %v311_v23 = vmul.f32 %v307_v18, %v307_v18 }
  0xad   : > { %v352_v25 = vpop.permute.xlu1 %351  ;;  %v350_v26 = vpop.permute.xlu0 %349 }
  0xae   : > { %612 = vrsqrt.f32 %v314_v22  ;;  %v313_v28 = vadd.f32 %v311_v23, %v309_v21  ;;  %v353_v29 = vsub.f32 %v350_v26, %v352_v25  ;;  %vm318_vm2 = vcmp.eq.f32.partialorder %v314_v22, inf }
  0xaf   : > { %v321_v44 = vand.u32 2147483648, %v314_v22  ;;  %vm320_vm3 = vcmp.eq.f32.partialorder %v314_v22, 0.0 }
  0xb0   : > { %v315_v31 = vadd.f32 1e-06, %v313_v28  ;;  %v355_v32 = vmul.f32 %v353_v29, %v353_v29 }
  0xb1   : > { %v386_v33 = vpop.permute.xlu1 %385  ;;  %v384_v34 = vpop.permute.xlu0 %383 }
  0xb2   : > { %v387_v36 = vsub.f32 %v384_v34, %v386_v33  ;;  %614 = vrsqrt.f32 %v315_v31  ;;  %v356_v37 = vadd.f32 %v355_v32, %v354_v30  ;;  %vm325_vm4 = vcmp.eq.f32.partialorder %v315_v31, inf }
  0xb3   : > { %v328_v49 = vand.u32 2147483648, %v315_v31  ;;  %vm327_vm5 = vcmp.eq.f32.partialorder %v315_v31, 0.0 }
  0xb4   : > { %v389_v38 = vmul.f32 %v387_v36, %v387_v36  ;;  %v357_v39 = vadd.f32 1e-06, %v356_v37 }
  0xb6   : > { %v390_v40 = vadd.f32 %v389_v38, %v388_v35  ;;  %616 = vrsqrt.f32 %v357_v39  ;;  %vm360_vm6 = vcmp.eq.f32.partialorder %v357_v39, inf  ;;  %v363_v54 = vand.u32 2147483648, %v357_v39 }
  0xb7   : > { %vm362_vm7 = vcmp.eq.f32.partialorder %v357_v39, 0.0 }
  0xb8   : > { %v391_v41 = vadd.f32 1e-06, %v390_v40 }
  0xba   : > { %618 = vrsqrt.f32 %v391_v41  ;;  %vm394_vm8 = vcmp.eq.f32.partialorder %v391_v41, inf  ;;  %v397_v59 = vand.u32 2147483648, %v391_v41  ;;  %vm396_vm9 = vcmp.eq.f32.partialorder %v391_v41, 0.0 }
  0xbb   : > { %v613_v42 = vpop.eup %612 }
  0xbc   : > { %v317_v43 = vmul.f32 %v613_v42, %v314_v22 }
  0xbe   : > { %v319_v45 = vsel %vm318_vm2, %v314_v22, %v317_v43 }
  0xbf   : > { %v322_v46 = vsel %vm320_vm3, %v321_v44, %v319_v45  ;;  %v615_v47 = vpop.eup %614 }
  0xc0   : > { %330 = vst [vmem:[%s231_s10] sm:$0xff] %v322_v46  ;;  %v324_v48 = vmul.f32 %v615_v47, %v315_v31 }
  0xc2   : > { %v326_v50 = vsel %vm325_vm4, %v315_v31, %v324_v48 }
  0xc3   : > { %v329_v51 = vsel %vm327_vm5, %v328_v49, %v326_v50  ;;  %v617_v52 = vpop.eup %616 }
  0xc4   : > { %331 = vst [vmem:[%s231_s10 + $0x8] sm:$0xff] %v329_v51  ;;  %v359_v53 = vmul.f32 %v617_v52, %v357_v39 }
  0xc6   : > { %v361_v56 = vsel %vm360_vm6, %v357_v39, %v359_v53 }
  0xc7   : > { %v619_v55 = vpop.eup %618  ;;  %v364_v57 = vsel %vm362_vm7, %v363_v54, %v361_v56 }
  0xc8   : > { %v393_v58 = vmul.f32 %v619_v55, %v391_v41  ;;  %365 = vst [vmem:[%s231_s10] sm:$0x1] %v364_v57 }
  0xca   : > { %v395_v60 = vsel %vm394_vm8, %v391_v41, %v393_v58 }
  0xcb   : > { %v398_v61 = vsel %vm396_vm9, %v397_v59, %v395_v60 }
  0xcc   : > { %399 = vst [vmem:[%s231_s10 + $0xf] sm:$0x1] %v398_v61 }
  0xcd   : > { %661 = shalt.err (!%p658_p4)
}
  0xce   : > { %s662_s30 = scalar_lea.hbm %s880_s21, 256  ;;  %s666_s6 = scalar_lea.hbm %s933_s3, 512 }
  0xcf   : > { %p663_p7 = scmp.ne.s32.totalorder %s880_s21, %s662_s30  ;;  %p667_p2 = scmp.lt.s32.totalorder %s880_s21, %s933_s3 }
  0xd0   : > { %p668_p8 = scmp.lt.s32.totalorder %s666_s6, %s662_s30 }
  0xd1   : > { %p664_p10 = pnand %p663_p7, %p809_p9 }
  0xd2   : > { %p669_p12 = por %p668_p8, %p667_p2 }
  0xd3   : > { %p665_p13 = pneg %p664_p10 }
  0xd5   : > { %p670_p0 = pnand %p669_p12, %p665_p13 }
  0xd7   : > { %673 = shalt.err (!%p670_p0)
}
  0xd8   : > { %s736_s9 = smov 128   ;;  %s737_s10 = smov 8  }
  0xd9   : > { %546 = dma.vmem_to_hbm [thread:$0]  (%p809_p9), %s882_s2, 256, %s880_s21, %s401_s15, %s736_s9, %s736_s9, %s737_s10  }
  0xda PF: > { %s431_s11 = sand.u32 1, %s708_s12   ;;  %p939_p1 = scmp.ge.s32.totalorder %s728_s17, 2 }
  0xdb   : > { %s432_s18 = scalar_lea.sflag [#allocation4], %s431_s11 }
  0xdc   : > { %p553_p3 = pnand %p939_p1, %p816_p11 }
  0xde   : > { %p554_p5 = pneg %p553_p3 }
  0xe0   : > { %703 = dma.done.wait (%p554_p5), %s432_s18, 256  }
  0xe1   : > { %705 = vsyncadd (%p554_p5), %s432_s18, 4294967040  ;;  %s19_s17 = sadd.s32 1, %s728_s17   ;;  %s940_s12 = smov %s712_s13 }
  0xe2   : > { %p16_p6 = scmp.ge.s32.totalorder %s19_s17, 4   ;;  %s941_s13 = smov %s716_s14 }
  0xe3   : > { %s942_s14 = smov %s814_s25  ;;  %s943_s15 = smov %s724_s16 }
  0xe4   : > { %s944_s16 = smov %s946_s19  ;;  %18 = sbr.rel (!%p16_p6) target bundleno = 6 (0x6), region = 81 }
  0xe9   :  { %437 = vsyncpa [#allocation3], 1 }
  0xea   :  { %439 = vsyncpa [#allocation3 + $0x1], 1 }
  0xeb   :  { %440 = vsyncpa [#allocation4], 1 }
  0xec   :  { %442 = vsyncpa [#allocation4 + $0x1], 1 }

</bundles_post_ra>
